<compile_context>
chip_gen: v6e
topology: v6e:2x2x1
jax: 0.10.0
libtpu: 0.0.40
codegen_flags: <defaults>
</compile_context>

<pallas_src>
import jax
import jax.numpy as jnp
from jax.experimental import pallas as pl
from jax.experimental.pallas import tpu as pltpu


# ---------------------------------------------------------------------------
# Kernel
# ---------------------------------------------------------------------------
def spatial_att_kernel(lhs_ref, a_ref, b_ref, x_ref, o_ref):
    # lhs_ref : (B, 2*HWp)      pooled [max | mean], bf16, grid-invariant (tiny)
    # a_ref   : (2*HWp, TN)     bf16 Toeplitz column tile ([max-rows ; mean-rows])
    # b_ref   : (1,)            conv bias, SMEM scalar
    # x_ref   : (B, C, TN)      input column tile
    # o_ref   : (B, C, TN)      output column tile
    conv = jnp.dot(lhs_ref[...], a_ref[...],
                   preferred_element_type=jnp.float32) + b_ref[0]   # (B, TN) f32
    att = jax.nn.sigmoid(conv)                                      # (B, TN)

    xv = x_ref[...]                                                 # (B, C, TN)
    o_ref[...] = (xv * att[:, None, :].astype(xv.dtype)).astype(o_ref.dtype)


# ---------------------------------------------------------------------------
# Parameter preparation (run ONCE per (weight, bias, H, W) and cached by caller)
# ---------------------------------------------------------------------------
def build_conv_matrix(weight, H, W, K, pad):
    """Toeplitz-style matrix A (2, H*W, H*W) such that for a (2,H,W) input `f`
    the 'same' conv output (flattened i*W+j) equals sum_c f[c].reshape(HW) @ A[c]."""
    w = weight[0]                                          # (2, K, K)
    p = jnp.arange(H)
    i = jnp.arange(H)
    q = jnp.arange(W)
    j = jnp.arange(W)
    ki = p[:, None] - i[None, :] + pad                     # (H, H)
    kj = q[:, None] - j[None, :] + pad                     # (W, W)
    vi = (ki >= 0) & (ki < K)
    vj = (kj >= 0) & (kj < K)
    kic = jnp.clip(ki, 0, K - 1)
    kjc = jnp.clip(kj, 0, K - 1)
    # G[c, p, i, q, j] = w[c, p-i+pad, q-j+pad] (0 when kernel index out of range)
    G = w[:, kic[:, :, None, None], kjc[None, None, :, :]]     # (2, H, H, W, W)
    mask = (vi[:, :, None, None] & vj[None, None, :, :]).astype(w.dtype)
    G = G * mask[None]
    # reorder to (c, p, q, i, j) and flatten: rows = c,(p,q)  cols = (i,j)
    A = jnp.transpose(G, (0, 1, 3, 2, 4)).reshape(2, H * W, H * W)
    return A


def prepare_spatial_att_params(weight, bias, H, W):
    """Build the stacked bf16 Toeplitz matrix + f32 bias once (weights are fixed
    at inference; do NOT rebuild per forward call)."""
    K = weight.shape[-1]
    pad = K // 2
    HW = H * W
    HWp = ((HW + 127) // 128) * 128                        # lane-dense, mult of 128

    A = build_conv_matrix(weight, H, W, K, pad)            # (2, HW, HW) f32
    A2 = jnp.zeros((2 * HWp, HWp), jnp.float32)
    A2 = A2.at[:HW, :HW].set(A[0]).at[HWp:HWp + HW, :HW].set(A[1])
    A2 = jax.device_put(A2.astype(jnp.bfloat16))
    b1 = jax.device_put(bias.reshape(1).astype(jnp.float32))
    return A2, b1


# ---------------------------------------------------------------------------
# Tile selection (per chip generation)
# ---------------------------------------------------------------------------
def _tensorcores_per_chip():
    try:
        kind = jax.devices()[0].device_kind.lower().replace(" ", "")
    except Exception:  # pragma: no cover - conservative fallback
        return 1
    # v7x has 2 TensorCores per chip; v5e/v6e have 1.
    return 2 if ("v7" in kind or "tpu7" in kind) else 1


def _pick_tile_n(HWp, num_cores):
    # Lane-dense (multiple of 128) tiles dividing HWp.
    # Single grid step on single-TC chips; >= one tile per core on dual-TC v7x.
    if num_cores > 1 and HWp >= num_cores * 128 and (HWp // num_cores) % 128 == 0:
        tn = HWp // num_cores
    else:
        tn = HWp
    # Bound the double-buffered (2*HWp, tn) bf16 A2 strip for VMEM headroom
    # (matters on v7x's 64 MiB VMEM when H*W grows).
    while tn > 512 and (tn // 2) % 128 == 0 and HWp % (tn // 2) == 0:
        tn //= 2
    return tn


# ---------------------------------------------------------------------------
# Forward wrapper
# ---------------------------------------------------------------------------
def spatial_att(x, A2, bias1, *, tile_n=None):
    B, C, H, W = x.shape
    HW = H * W
    HWp = A2.shape[-1]
    assert A2.shape == (2 * HWp, HWp)

    if tile_n is None:
        tile_n = _pick_tile_n(HWp, _tensorcores_per_chip())
    grid_n = HWp // tile_n

    # Channel pooling hoisted out of the grid loop: computed once per call.
    xf = x.reshape(B, C, HW)
    if HWp != HW:
        xf = jnp.pad(xf, ((0, 0), (0, 0), (0, HWp - HW)))
    mx = jnp.max(xf, axis=1)                                # (B, HWp) channel max
    mn = jnp.mean(xf.astype(jnp.float32), axis=1)           # (B, HWp) channel mean
    lhs = jnp.concatenate(
        [mx.astype(jnp.float32), mn], axis=-1).astype(jnp.bfloat16)   # (B, 2*HWp)
    # NOTE: M = B rows of the MXU push; at realistic sizes pad/pack rows to >=8
    # for better MXU row utilization (FLOPs are negligible at this size).

    out = pl.pallas_call(
        spatial_att_kernel,
        out_shape=jax.ShapeDtypeStruct((B, C, HWp), x.dtype),
        grid_spec=pl.GridSpec(
            grid=(grid_n,),
            in_specs=[
                pl.BlockSpec((B, 2 * HWp), lambda j: (0, 0)),          # pooled lhs (tiny)
                pl.BlockSpec((2 * HWp, tile_n), lambda j: (0, j)),     # A2 column tile
                pl.BlockSpec(memory_space=pltpu.MemorySpace.SMEM),     # bias scalar
                pl.BlockSpec((B, C, tile_n), lambda j: (0, 0, j)),     # x column tile
            ],
            out_specs=pl.BlockSpec((B, C, tile_n), lambda j: (0, 0, j)),
        ),
        compiler_params=pltpu.CompilerParams(
            dimension_semantics=("parallel",)),
    )(lhs, A2, bias1, xf)

    if HWp != HW:
        out = out[:, :, :HW]
    return out.reshape(B, C, H, W)


# ---------------------------------------------------------------------------
# Pure-JAX reference matching the PyTorch module
# ---------------------------------------------------------------------------
def ref_forward(x, weight, bias, K):
    mx = jnp.max(x, axis=1, keepdims=True)
    mn = jnp.mean(x, axis=1, keepdims=True)
    feat = jnp.concatenate([mx, mn], axis=1)                # (B, 2, H, W)
    pad = K // 2
    out = jax.lax.conv_general_dilated(
        feat, weight, window_strides=(1, 1),
        padding=[(pad, pad), (pad, pad)],
        dimension_numbers=("NCHW", "OIHW", "NCHW"))
    out = out + bias.reshape(1, 1, 1, 1)
    return x * jax.nn.sigmoid(out)


if __name__ == "__main__":
    B, C, H, W = 2, 4, 16, 16
    K = 49                                                  # SpatialAtt default kernel_size

    key = jax.random.PRNGKey(0)
    kw, kb, kx = jax.random.split(key, 3)
    # Deterministic synthetic parameters (Conv2d(2, 1, 49) shapes).
    weight = jax.random.normal(kw, (1, 2, K, K), jnp.float32) * (1.0 / K)
    bias = jax.random.normal(kb, (1,), jnp.float32) * 0.1
    x = jax.random.normal(kx, (B, C, H, W), jnp.float32)

    # Built once and reused across forward calls (weights fixed at inference).
    A2, b1 = prepare_spatial_att_params(weight, bias, H, W)

    y = spatial_att(x, A2, b1)
    jax.block_until_ready(y)

    y_ref = ref_forward(x, weight, bias, K)
    assert y.shape == (B, C, H, W)
    # bf16 matmul operands (f32 accumulation) vs an all-f32 reference: relaxed tol.
    err = float(jnp.max(jnp.abs(y - y_ref)))
    assert jnp.allclose(y, y_ref, atol=1e-2, rtol=1e-2), f"mismatch vs reference (max abs err {err})"

    print("KERNEL_OK")
</pallas_src>

<mosaic_0001>
module attributes {stable_mosaic.version = 11 : i64} {
  func.func @spatial_att_kernel(%arg0: i32, %arg1: memref<2x512xbf16, #tpu.memory_space<vmem>>, %arg2: memref<512x256xbf16, #tpu.memory_space<vmem>>, %arg3: memref<1xf32, #tpu.memory_space<smem>>, %arg4: memref<2x4x256xf32, #tpu.memory_space<vmem>>, %arg5: memref<2x4x256xf32, #tpu.memory_space<vmem>>) attributes {dimension_semantics = [#tpu.dimension_semantics<parallel>], iteration_bounds = array<i64: 1>, scalar_prefetch = 0 : i64, scratch_operands = 0 : i64, tpu.core_type = #tpu.core_type<tc>, window_params = [{pipeline_mode = #tpu.pipeline_mode<synchronous>, transform_indices = @transform_0, window_bounds = array<i64: 2, 512>}, {transform_indices = @transform_1, window_bounds = array<i64: 512, 256>}, {transform_indices = @transform_2, window_bounds = array<i64: 1>}, {transform_indices = @transform_3, window_bounds = array<i64: 2, 4, 256>}, {transform_indices = @transform_4, window_bounds = array<i64: 2, 4, 256>}]} {
    %c0 = arith.constant 0 : index
    %c0_0 = arith.constant 0 : index
    %0 = vector.load %arg1[%c0, %c0_0] : memref<2x512xbf16, #tpu.memory_space<vmem>>, vector<2x512xbf16>
    %c0_1 = arith.constant 0 : index
    %c0_2 = arith.constant 0 : index
    %1 = vector.load %arg2[%c0_1, %c0_2] : memref<512x256xbf16, #tpu.memory_space<vmem>>, vector<512x256xbf16>
    %cst = arith.constant dense<0.000000e+00> : vector<2x256xf32>
    %2 = tpu.matmul %0, %1, %cst {dimension_numbers = #tpu.dot_dimension_numbers<[1], [0], [0], [1], [0, 0, 1, 1], [], []>} : vector<2x512xbf16>, vector<512x256xbf16>, vector<2x256xf32> -> vector<2x256xf32>
    %c0_3 = arith.constant 0 : index
    %3 = memref.load %arg3[%c0_3] : memref<1xf32, #tpu.memory_space<smem>>
    %4 = vector.broadcast %3 : f32 to vector<2x256xf32>
    %5 = arith.addf %2, %4 : vector<2x256xf32>
    %6 = arith.negf %5 : vector<2x256xf32>
    %7 = math.exp %6 : vector<2x256xf32>
    %cst_4 = arith.constant 1.000000e+00 : f32
    %8 = vector.broadcast %cst_4 : f32 to vector<2x256xf32>
    %9 = arith.addf %8, %7 : vector<2x256xf32>
    %10 = arith.divf %8, %9 : vector<2x256xf32>
    %c0_5 = arith.constant 0 : index
    %c0_6 = arith.constant 0 : index
    %c0_7 = arith.constant 0 : index
    %11 = vector.load %arg4[%c0_5, %c0_6, %c0_7] : memref<2x4x256xf32, #tpu.memory_space<vmem>>, vector<2x4x256xf32>
    %12 = vector.shape_cast %10 : vector<2x256xf32> to vector<2x1x256xf32>
    %13 = vector.broadcast %12 : vector<2x1x256xf32> to vector<2x4x256xf32>
    %14 = arith.mulf %11, %13 : vector<2x4x256xf32>
    %c0_8 = arith.constant 0 : index
    %c0_9 = arith.constant 0 : index
    %c0_10 = arith.constant 0 : index
    %15 = vector.load %arg5[%c0_8, %c0_9, %c0_10] : memref<2x4x256xf32, #tpu.memory_space<vmem>>, vector<2x4x256xf32>
    tpu.vector_store %arg5[%c0_8, %c0_9, %c0_10], %14 {strides = array<i32>} : memref<2x4x256xf32, #tpu.memory_space<vmem>>, vector<2x4x256xf32>,
    return
  }
  func.func @transform_0(%arg0: i32) -> (i32, i32) {
    %c0_i32 = arith.constant 0 : i32
    %c0_i32_0 = arith.constant 0 : i32
    %c0_i32_1 = arith.constant 0 : i32
    return %c0_i32, %c0_i32_0 : i32, i32
  }
  func.func @transform_1(%arg0: i32) -> (i32, i32) {
    %c0_i32 = arith.constant 0 : i32
    %c0_i32_0 = arith.constant 0 : i32
    return %c0_i32, %arg0 : i32, i32
  }
  func.func @transform_2(%arg0: i32) -> i32 {
    %c0_i32 = arith.constant 0 : i32
    %c0_i32_0 = arith.constant 0 : i32
    return %c0_i32 : i32
  }
  func.func @transform_3(%arg0: i32) -> (i32, i32, i32) {
    %c0_i32 = arith.constant 0 : i32
    %c0_i32_0 = arith.constant 0 : i32
    %c0_i32_1 = arith.constant 0 : i32
    return %c0_i32, %c0_i32_0, %arg0 : i32, i32, i32
  }
  func.func @transform_4(%arg0: i32) -> (i32, i32, i32) {
    %c0_i32 = arith.constant 0 : i32
    %c0_i32_0 = arith.constant 0 : i32
    %c0_i32_1 = arith.constant 0 : i32
    return %c0_i32, %c0_i32_0, %arg0 : i32, i32, i32
  }
}

</mosaic_0001>

<bundles_post_ra>
// kernel: tpu_custom_call.1
= control target key start
LH: loop header
LB: loop body
LE: loop exit
PB: predicated region body
PF: predicated region fallthrough
CT: control target
= control target key end

     0   :  { %10 = vsyncpa [#allocation4], 0  ;;  %s969_s0 = inlined_call_operand.hbm [shape: bf16[2,512], index: 0, kind: input, shape index: {}]   ;;  %s970_s1 = inlined_call_operand.hbm [shape: bf16[512,256], index: 1, kind: input, shape index: {}]   ;;  %s971_s2 = inlined_call_operand.<no memory space> [shape: f32[1], index: 2, kind: input, shape index: {}]   ;;  %s972_s3 = inlined_call_operand.hbm [shape: f32[2,4,256], index: 3, kind: input, shape index: {}]   ;;  %s973_s4 = inlined_call_operand.hbm [shape: f32[2,4,256], index: 4, kind: output, shape index: {}]  }
   0x1   :  { %11 = vsyncpa [#allocation7], 0 }
   0x2   :  { %12 = vsyncpa [#allocation5], 0  ;;  %s901_s15 = smov [#allocation6]  }
   0x3   :  { %s28_s16 = sshll.u32 %s901_s15, 4  ;;  %s29_s16 = int_to_ptr.vmem [resolvable:$true] %s28_s16 }
   0x4   :  { %s823_s17 = scalar_lea.vmem %s29_s16, 8192  ;;  %p828_p1 = scmp.lt.s32.totalorder %s29_s16, %s29_s16 }
   0x5   :  { %p824_p0 = scmp.ne.s32.totalorder %s29_s16, %s823_s17  ;;  %p829_p2 = scmp.lt.s32.totalorder %s823_s17, %s823_s17 }
   0x7   :  { %p830_p3 = por %p829_p2, %p828_p1 }
   0x9   :  { %p831_p4 = pnand %p830_p3, %p824_p0 }
   0xb   :  { %834 = shalt.err (!%p831_p4)
}
   0xc   :  { %s902_s18 = smov 128   ;;  %s903_s19 = smov 8  }
   0xd   :  { %34 = dma.hbm_to_vmem [thread:$0]  %s970_s1, 8192, %s29_s16, [#allocation7], %s902_s18, %s902_s18, %s903_s19  }
   0xe   :  { %s904_s22 = smov [#allocation3]   ;;  %s905_s24 = smov [#allocation8]  }
   0xf   :  { %s19_s23 = sshll.u32 %s904_s22, 4  ;;  %s42_s25 = sshll.u32 %s905_s24, 4  ;;  %s20_s23 = int_to_ptr.vmem [resolvable:$true] %s19_s23  ;;  %s43_s25 = int_to_ptr.vmem [resolvable:$true] %s42_s25 }
  0x10   :  { %s843_s26 = scalar_lea.vmem %s20_s23, 64  ;;  %p848_p6 = scmp.lt.s32.totalorder %s20_s23, %s20_s23 }
  0x11   :  { %p844_p5 = scmp.ne.s32.totalorder %s20_s23, %s843_s26  ;;  %p849_p7 = scmp.lt.s32.totalorder %s843_s26, %s843_s26 }
  0x13   :  { %p850_p8 = por %p849_p7, %p848_p6 }
  0x15   :  { %p851_p9 = pnand %p850_p8, %p844_p5 }
  0x17   :  { %854 = shalt.err (!%p851_p9)
}
  0x18   :  { %22 = dma.hbm_to_vmem [thread:$0]  %s969_s0, 64, %s20_s23, [#allocation4]  }
  0x19   :  { %s863_s29 = scalar_lea.vmem %s43_s25, 256  ;;  %p868_p11 = scmp.lt.s32.totalorder %s43_s25, %s43_s25 }
  0x1a   :  { %p864_p10 = scmp.ne.s32.totalorder %s43_s25, %s863_s29  ;;  %p869_p12 = scmp.lt.s32.totalorder %s863_s29, %s863_s29 }
  0x1c   :  { %p870_p13 = por %p869_p12, %p868_p11 }
  0x1e   :  { %p871_p0 = pnand %p870_p13, %p864_p10 }
  0x20   :  { %874 = shalt.err (!%p871_p0)
}
  0x21   :  { %48 = dma.hbm_to_vmem [thread:$0]  %s972_s3, 256, %s43_s25, [#allocation7], %s902_s18, %s902_s18, %s903_s19  }
  0x22   :  { %895 = dma.done.wait [#allocation4], 64  }
  0x23   :  { %896 = vsyncadd [#allocation4], 4294967232 }
  0x24   :  { %897 = dma.done.wait [#allocation7], 8448  }
  0x25   :  { %898 = vsyncadd [#allocation7], 4294958848  ;;  %v711_v0 = vld [vmem:[#allocation6 + $0x74] ss:$8 sps:$4 sm:$0xff]   ;;  %v715_v2 = vld [vmem:[#allocation6 + $0x70] ss:$8 sps:$4 sm:$0xff]   ;;  %v137_v40 = vlaneseq }
  0x26   :  { %v713_v1 = vld [vmem:[#allocation6 + $0x174] ss:$8 sps:$4 sm:$0xff]   ;;  %474 = vmatprep.subr.bf16.mxu0 %v711_v0  ;;  %v716_v3 = vld [vmem:[#allocation6 + $0x170] ss:$8 sps:$4 sm:$0xff]   ;;  %v717_v4 = vld [vmem:[#allocation6 + $0x64] ss:$8 sps:$4 sm:$0xff]  }
  0x27   :  { %515 = vmatprep.subr.bf16.mxu1 %v713_v1  ;;  %475 = vmatpush1.bf16.msra.mxu0 %v715_v2  ;;  %v719_v5 = vld [vmem:[#allocation6 + $0x164] ss:$8 sps:$4 sm:$0xff]   ;;  %v721_v6 = vld [vmem:[#allocation6 + $0x60] ss:$8 sps:$4 sm:$0xff]   ;;  %v723_v8 = vld [vmem:[#allocation6 + $0x54] ss:$8 sps:$4 sm:$0xff]  }
  0x28   :  { %516 = vmatpush1.bf16.msra.mxu1 %v716_v3  ;;  %476 = vmatprep.subr.bf16.mxu0 %v717_v4  ;;  %v722_v7 = vld [vmem:[#allocation6 + $0x160] ss:$8 sps:$4 sm:$0xff]   ;;  %v725_v9 = vld [vmem:[#allocation6 + $0x154] ss:$8 sps:$4 sm:$0xff]   ;;  %v727_v10 = vld [vmem:[#allocation6 + $0x50] ss:$8 sps:$4 sm:$0xff]  }
  0x29   :  { %517 = vmatprep.subr.bf16.mxu1 %v719_v5  ;;  %v728_v11 = vld [vmem:[#allocation6 + $0x150] ss:$8 sps:$4 sm:$0xff]   ;;  %v729_v12 = vld [vmem:[#allocation6 + $0x44] ss:$8 sps:$4 sm:$0xff]   ;;  %v733_v14 = vld [vmem:[#allocation6 + $0x40] ss:$8 sps:$4 sm:$0xff]  }
  0x2a   :  { %v731_v13 = vld [vmem:[#allocation6 + $0x144] ss:$8 sps:$4 sm:$0xff]   ;;  %v734_v15 = vld [vmem:[#allocation6 + $0x140] ss:$8 sps:$4 sm:$0xff]   ;;  %v735_v16 = vld [vmem:[#allocation6 + $0x34] ss:$8 sps:$4 sm:$0xff]  }
  0x2b   :  { %477 = vmatpush1.bf16.msra.mxu0 %v721_v6  ;;  %v737_v17 = vld [vmem:[#allocation6 + $0x134] ss:$8 sps:$4 sm:$0xff]   ;;  %v739_v18 = vld [vmem:[#allocation6 + $0x30] ss:$8 sps:$4 sm:$0xff]   ;;  %v741_v20 = vld [vmem:[#allocation6 + $0x24] ss:$8 sps:$4 sm:$0xff]  }
  0x2c   :  { %518 = vmatpush1.bf16.msra.mxu1 %v722_v7  ;;  %478 = vmatprep.subr.bf16.mxu0 %v723_v8  ;;  %v740_v19 = vld [vmem:[#allocation6 + $0x130] ss:$8 sps:$4 sm:$0xff]   ;;  %v743_v21 = vld [vmem:[#allocation6 + $0x124] ss:$8 sps:$4 sm:$0xff]   ;;  %v745_v22 = vld [vmem:[#allocation6 + $0x20] ss:$8 sps:$4 sm:$0xff]  }
  0x2d   :  { %519 = vmatprep.subr.bf16.mxu1 %v725_v9  ;;  %v746_v23 = vld [vmem:[#allocation6 + $0x120] ss:$8 sps:$4 sm:$0xff]   ;;  %v747_v24 = vld [vmem:[#allocation6 + $0x14] ss:$8 sps:$4 sm:$0xff]   ;;  %v751_v26 = vld [vmem:[#allocation6 + $0x10] ss:$8 sps:$4 sm:$0xff]  }
  0x2e   :  { %v749_v25 = vld [vmem:[#allocation6 + $0x114] ss:$8 sps:$4 sm:$0xff]   ;;  %v752_v27 = vld [vmem:[#allocation6 + $0x110] ss:$8 sps:$4 sm:$0xff]   ;;  %v753_v28 = vld [vmem:[#allocation6 + $0x4] ss:$8 sps:$4 sm:$0xff]  }
  0x2f   :  { %479 = vmatpush1.bf16.msra.mxu0 %v727_v10  ;;  %v755_v29 = vld [vmem:[#allocation6 + $0x104] ss:$8 sps:$4 sm:$0xff]   ;;  %v757_v30 = vld [vmem:[#allocation6] ss:$8 sps:$4 sm:$0xff]   ;;  %v759_v32 = vld [vmem:[#allocation6 + $0xf4] ss:$8 sps:$4 sm:$0xff]  }
  0x30   :  { %520 = vmatpush1.bf16.msra.mxu1 %v728_v11  ;;  %480 = vmatprep.subr.bf16.mxu0 %v729_v12  ;;  %v758_v31 = vld [vmem:[#allocation6 + $0x100] ss:$8 sps:$4 sm:$0xff]   ;;  %v761_v33 = vld [vmem:[#allocation6 + $0x1f4] ss:$8 sps:$4 sm:$0xff]   ;;  %v763_v34 = vld [vmem:[#allocation6 + $0xf0] ss:$8 sps:$4 sm:$0xff]   ;;  %v124_v12 = vstv %s971_s2 }
  0x31   :  { %521 = vmatprep.subr.bf16.mxu1 %v731_v13  ;;  %v764_v35 = vld [vmem:[#allocation6 + $0x1f0] ss:$8 sps:$4 sm:$0xff]   ;;  %v765_v36 = vld [vmem:[#allocation6 + $0xe4] ss:$8 sps:$4 sm:$0xff]   ;;  %v906_v38 = vmov 1966171168  }
  0x32   :  { %v767_v37 = vld [vmem:[#allocation6 + $0x1e4] ss:$8 sps:$4 sm:$0xff]   ;;  %v135_v39 = vunpack.c.l.s4 %v906_v38  ;;  %v769_v41 = vld [vmem:[#allocation6 + $0xe0] ss:$8 sps:$4 sm:$0xff]   ;;  %v771_v43 = vld [vmem:[#allocation6 + $0xd4] ss:$8 sps:$4 sm:$0xff]  }
  0x33   :  { %481 = vmatpush1.bf16.msra.mxu0 %v733_v14  ;;  %v770_v42 = vld [vmem:[#allocation6 + $0x1e0] ss:$8 sps:$4 sm:$0xff]   ;;  %v773_v44 = vld [vmem:[#allocation6 + $0x1d4] ss:$8 sps:$4 sm:$0xff]   ;;  %v948_v46 = vshrl.u32 %v137_v40, 7  ;;  %s907_s2 = smov [#allocation9]  }
  0x34   :  { %522 = vmatpush1.bf16.msra.mxu1 %v734_v15  ;;  %482 = vmatprep.subr.bf16.mxu0 %v735_v16  ;;  %v136_v45 = vunpack.c.0.s8 %v135_v39  ;;  %v775_v47 = vld [vmem:[#allocation6 + $0xd0] ss:$8 sps:$4 sm:$0xff]   ;;  %v777_v49 = vld [vmem:[#allocation6 + $0xc4] ss:$8 sps:$4 sm:$0xff]   ;;  %v781_v53 = vld [vmem:[#allocation6 + $0xc0] ss:$8 sps:$4 sm:$0xff]  }
  0x35   :  { %523 = vmatprep.subr.bf16.mxu1 %v737_v17  ;;  %v776_v48 = vld [vmem:[#allocation6 + $0x1d0] ss:$8 sps:$4 sm:$0xff]   ;;  %v779_v50 = vld [vmem:[#allocation6 + $0x1c4] ss:$8 sps:$4 sm:$0xff]   ;;  %v782_v54 = vld [vmem:[#allocation6 + $0x1c0] ss:$8 sps:$4 sm:$0xff]  }
  0x36   :  { %v951_v51 = vsub.s32 %v136_v45, %v948_v46  ;;  %v637_v52 = vld.sshfl [vmem:[#allocation3] sm:$0x33 pattern:$0x75316420]  ;;  %v787_v59 = vld [vmem:[#allocation6 + $0xb0] ss:$8 sps:$4 sm:$0xff]  }
  0x37   :  { %483 = vmatpush1.bf16.msra.mxu0 %v739_v18  ;;  %v133_v55 = vcombine.high %v637_v52, %v637_v52  ;;  %v783_v56 = vld [vmem:[#allocation6 + $0xb4] ss:$8 sps:$4 sm:$0xff]   ;;  %v788_v60 = vld [vmem:[#allocation6 + $0x1b0] ss:$8 sps:$4 sm:$0xff]   ;;  %v789_v62 = vld [vmem:[#allocation6 + $0xa4] ss:$8 sps:$4 sm:$0xff]  }
  0x38   :  { %524 = vmatpush1.bf16.msra.mxu1 %v740_v19  ;;  %484 = vmatprep.subr.bf16.mxu0 %v741_v20  ;;  %v785_v57 = vld [vmem:[#allocation6 + $0x1b4] ss:$8 sps:$4 sm:$0xff]   ;;  %v791_v63 = vld [vmem:[#allocation6 + $0x1a4] ss:$8 sps:$4 sm:$0xff]   ;;  %v793_v0 = vld [vmem:[#allocation6 + $0xa0] ss:$8 sps:$4 sm:$0xff]   ;;  %v140_v8 = vrot.slane %v637_v52, %v951_v51 }
  0x39   :  { %525 = vmatprep.subr.bf16.mxu1 %v743_v21  ;;  %v147_v58 = vrot.slane %v133_v55, %v951_v51  ;;  %v794_v1 = vld [vmem:[#allocation6 + $0x1a0] ss:$8 sps:$4 sm:$0xff]   ;;  %v795_v2 = vld [vmem:[#allocation6 + $0x94] ss:$8 sps:$4 sm:$0xff]   ;;  %v799_v4 = vld [vmem:[#allocation6 + $0x90] ss:$8 sps:$4 sm:$0xff]  }
  0x3a   :  { %v797_v3 = vld [vmem:[#allocation6 + $0x194] ss:$8 sps:$4 sm:$0xff]   ;;  %v800_v5 = vld [vmem:[#allocation6 + $0x190] ss:$8 sps:$4 sm:$0xff]   ;;  %v801_v6 = vld [vmem:[#allocation6 + $0x84] ss:$8 sps:$4 sm:$0xff]   ;;  %v148_v11 = vcombine.high %v140_v8, %v140_v8 }
  0x3b   :  { %485 = vmatpush1.bf16.msra.mxu0 %v745_v22  ;;  %v149_v61 = vcombine.high %v147_v58, %v147_v58  ;;  %506 = vmatprep.mubr.bf16.mxu0 %v147_v58  ;;  %v803_v7 = vld [vmem:[#allocation6 + $0x184] ss:$8 sps:$4 sm:$0xff]   ;;  %v805_v9 = vld [vmem:[#allocation6 + $0x80] ss:$8 sps:$4 sm:$0xff]   ;;  %s624_s5 = sshll.u32 %s907_s2, 4  ;;  %s625_s5 = int_to_ptr.vmem [resolvable:$true] %s624_s5 }
  0x3c   :  { %526 = vmatpush1.bf16.msra.mxu1 %v746_v23  ;;  %486 = vmatprep.subr.bf16.mxu0 %v747_v24  ;;  %v806_v10 = vld [vmem:[#allocation6 + $0x180] ss:$8 sps:$4 sm:$0xff]   ;;  %s875_s6 = scalar_lea.vmem %s625_s5, 256  ;;  %p880_p2 = scmp.lt.s32.totalorder %s625_s5, %s625_s5 }
  0x3d   :  { %527 = vmatprep.subr.bf16.mxu1 %v749_v25  ;;  %547 = vmatprep.mubr.bf16.mxu1 %v149_v61  ;;  %p876_p1 = scmp.ne.s32.totalorder %s625_s5, %s875_s6  ;;  %p881_p3 = scmp.lt.s32.totalorder %s875_s6, %s875_s6 }
  0x3f   :  { %487 = vmatpush1.bf16.msra.mxu0 %v751_v26  ;;  %p882_p4 = por %p881_p3, %p880_p2 }
  0x40   :  { %528 = vmatpush1.bf16.msra.mxu1 %v752_v27  ;;  %488 = vmatprep.subr.bf16.mxu0 %v753_v28 }
  0x41   :  { %529 = vmatprep.subr.bf16.mxu1 %v755_v29  ;;  %p883_p5 = pnand %p882_p4, %p876_p1 }
  0x43   :  { %489 = vmatpush1.bf16.msra.mxu0 %v757_v30 }
  0x44   :  { %530 = vmatpush1.bf16.msra.mxu1 %v758_v31  ;;  %490 = vmatprep.subr.bf16.mxu0 %v759_v32 }
  0x45   :  { %531 = vmatprep.subr.bf16.mxu1 %v761_v33 }
  0x47   :  { %491 = vmatpush2.bf16.msra.mxu0 %v763_v34 }
  0x48   :  { %532 = vmatpush2.bf16.msra.mxu1 %v764_v35  ;;  %492 = vmatprep.subr.bf16.mxu0 %v765_v36  ;;  %v597_v35 = vsub.s32 0, %v948_v46  ;;  %v601_v36 = vsub.s32 1, %v948_v46 }
  0x49   :  { %533 = vmatprep.subr.bf16.mxu1 %v767_v37 }
  0x4b   :  { %493 = vmatpush2.bf16.msra.mxu0 %v769_v41 }
  0x4c   :  { %534 = vmatpush2.bf16.msra.mxu1 %v770_v42  ;;  %494 = vmatprep.subr.bf16.mxu0 %v771_v43  ;;  %v568_v42 = vld [vmem:[#allocation8] sm:$0xff] }
  0x4d   :  { %535 = vmatprep.subr.bf16.mxu1 %v773_v44 }
  0x4f   :  { %495 = vmatpush2.bf16.msra.mxu0 %v775_v47  ;;  %v569_v47 = vld [vmem:[#allocation8 + $0x8] sm:$0xff] }
  0x50   :  { %536 = vmatpush2.bf16.msra.mxu1 %v776_v48  ;;  %496 = vmatprep.subr.bf16.mxu0 %v777_v49 }
  0x51   :  { %537 = vmatprep.subr.bf16.mxu1 %v779_v50 }
  0x53   :  { %497 = vmatpush2.bf16.msra.mxu0 %v781_v53 }
  0x54   :  { %538 = vmatpush2.bf16.msra.mxu1 %v782_v54  ;;  %498 = vmatprep.subr.bf16.mxu0 %v783_v56 }
  0x55   :  { %539 = vmatprep.subr.bf16.mxu1 %v785_v57 }
  0x57   :  { %499 = vmatpush2.bf16.msra.mxu0 %v787_v59 }
  0x58   :  { %540 = vmatpush2.bf16.msra.mxu1 %v788_v60  ;;  %500 = vmatprep.subr.bf16.mxu0 %v789_v62 }
  0x59   :  { %541 = vmatprep.subr.bf16.mxu1 %v791_v63 }
  0x5b   :  { %501 = vmatpush2.bf16.msra.mxu0 %v793_v0 }
  0x5c   :  { %542 = vmatpush2.bf16.msra.mxu1 %v794_v1  ;;  %502 = vmatprep.subr.bf16.mxu0 %v795_v2 }
  0x5d   :  { %543 = vmatprep.subr.bf16.mxu1 %v797_v3 }
  0x5f   :  { %503 = vmatpush2.bf16.msra.mxu0 %v799_v4 }
  0x60   :  { %544 = vmatpush2.bf16.msra.mxu1 %v800_v5  ;;  %504 = vmatprep.subr.bf16.mxu0 %v801_v6 }
  0x61   :  { %545 = vmatprep.subr.bf16.mxu1 %v803_v7 }
  0x63   :  { %505 = vmatpush2.bf16.msra.mxu0 %v805_v9 }
  0x64   :  { %546 = vmatpush2.bf16.msra.mxu1 %v806_v10 }
  0x66   :  { %507 = vmatmul.mubr.bf16.vlgmr.msra.gmra.mxu0 %v140_v8 }
  0x67   :  { %548 = vmatmul.mubr.bf16.vlgmr.msra.gmra.mxu1 %v148_v11 }
 0x126   :  { %v508_v13 = vpop.f32.mrf.mxu0 }
 0x127   :  { %v549_v14 = vpop.f32.mrf.mxu1  ;;  %v509_v15 = vadd.f32 %v508_v13, %v124_v12 }
 0x128   :  { %v510_v16 = vpop.f32.mrf.mxu0 }
 0x129   :  { %v551_v17 = vpop.f32.mrf.mxu1  ;;  %v550_v18 = vadd.f32 %v549_v14, %v509_v15  ;;  %v511_v19 = vadd.f32 %v510_v16, %v124_v12 }
 0x12a   :  { %v512_v20 = vpop.f32.mrf.mxu0 }
 0x12b   :  { %v553_v21 = vpop.f32.mrf.mxu1  ;;  %v702_v22 = vmul.f32 -1.442695, %v550_v18  ;;  %v552_v23 = vadd.f32 %v551_v17, %v511_v19 }
 0x12c   :  { %v513_v24 = vpop.f32.mrf.mxu0 }
 0x12d   :  { %v554_v25 = vpop.f32.mrf.mxu1  ;;  %807 = vpow2.f32 %v702_v22  ;;  %v703_v26 = vmul.f32 -1.442695, %v552_v23 }
 0x12f   :  { %809 = vpow2.f32 %v703_v26 }
 0x13a   :  { %v808_v27 = vpop.eup %807 }
 0x13b   :  { %v562_v28 = vadd.f32 1.0, %v808_v27 }
 0x13c   :  { %v810_v29 = vpop.eup %809 }
 0x13d   :  { %v563_v30 = vadd.f32 1.0, %v810_v29  ;;  %811 = vrcp.f32 %v562_v28 }
 0x13f   :  { %813 = vrcp.f32 %v563_v30 }
 0x14a   :  { %v812_v31 = vpop.eup %811 }
 0x14c   :  { %v814_v32 = vpop.eup %813 }
 0x14d   :  { %v572_v33 = vcombine.low %v812_v31, %v814_v32 }
 0x14f   :  { %v579_v34 = vrot.slane %v572_v33, %v951_v51 }
 0x151   :  { %v580_v37 = vcombine.high %v579_v34, %v579_v34  ;;  %v587_v38 = vrot.slane %v579_v34, %v951_v51 }
 0x153   :  { %v594_v39 = vrot.slane %v580_v37, %v951_v51  ;;  %v598_v40 = vrot.slane %v587_v38, %v597_v35  ;;  %v602_v41 = vrot.slane %v587_v38, %v601_v36 }
 0x155   :  { %v606_v43 = vrot.slane %v594_v39, %v597_v35  ;;  %v610_v44 = vrot.slane %v594_v39, %v601_v36  ;;  %v611_v45 = vcombine.low %v598_v40, %v602_v41 }
 0x157   :  { %v612_v48 = vcombine.low %v606_v43, %v610_v44  ;;  %v615_v49 = vmul.f32 %v611_v45, %v568_v42 }
 0x159   :  { %v616_v50 = vmul.f32 %v612_v48, %v569_v47  ;;  %617 = vst [vmem:[#allocation9] sm:$0xff] %v615_v49 }
 0x15b   :  { %618 = vst [vmem:[#allocation9 + $0x8] sm:$0xff] %v616_v50 }
 0x15c   :  { %886 = shalt.err (!%p883_p5)
}
 0x15d   :  { %630 = dma.vmem_to_hbm [thread:$0]  %s625_s5, 256, %s973_s4, [#allocation5], %s902_s18, %s902_s18, %s903_s19  }
 0x15e   :  { %899 = dma.done.wait [#allocation5], 256  }
 0x15f   :  { %900 = vsyncadd [#allocation5], 4294967040 }
 0x160   :  { %634 = vsyncpa [#allocation4], 1 }
 0x161   :  { %635 = vsyncpa [#allocation7], 1 }
 0x162   :  { %636 = vsyncpa [#allocation5], 1 }

</bundles_post_ra>
